<compile_context>
chip_gen: v7x
topology: tpu7x:2x2x1
jax: 0.10.0
libtpu: 0.0.40
codegen_flags: <defaults>
</compile_context>

<pallas_src>
import jax
import jax.numpy as jnp
from jax.experimental import pallas as pl
from jax.experimental.pallas import tpu as pltpu

FINE_CLASSES = 100
COARSE_GROUP_SIZE = 5   # each coarse class owns exactly 5 fine classes (topk k=5)
MAX_TILE_B = 2048       # batch rows per grid step (2048*100*4B = 800 KiB / input buffer)


def _round_up(x, m):
    return ((x + m - 1) // m) * m


def _cdiv(a, b):
    return -(-a // b)


def _oce_kernel(f2c_ref, yc_ref, yhat_ref, out_ref):
    """One batch tile of the outer-complement-entropy loss.

    f2c_ref  : [1, C]   i32  fine->coarse map
    yc_ref   : [TB, 1]  i32  coarse label per sample (padded rows = -2)
    yhat_ref : [TB, C]  logits (input dtype, cast to f32 in-kernel)
    out_ref  : [1, C]   f32  per-class partial sums for this tile
    """
    logits = yhat_ref[...].astype(jnp.float32)                  # [TB, C]
    f2c = f2c_ref[...]                                          # [1, C]
    yc = yc_ref[...]                                            # [TB, 1]

    # Row-wise softmax pieces, kept unnormalized (softmax never materialized).
    m = jnp.max(logits, axis=1, keepdims=True)                  # [TB, 1]
    z = logits - m                                              # [TB, C]
    e = jnp.exp(z)                                              # one exp per element (EUP)
    sumexp = jnp.sum(e, axis=1, keepdims=True)                  # [TB, 1]

    # Group mask: classes sharing the sample's coarse label.
    group = (f2c == yc)                                         # [TB, C] bool

    # Yg = softmax mass over the group (== topk/gather/sum in the reference).
    eg = jnp.sum(jnp.where(group, e, 0.0), axis=1, keepdims=True)    # [TB, 1]
    yg = eg * pl.reciprocal(sumexp, approx=False)                    # [TB, 1]
    yg_ = 1.0 - yg + 1e-07                                           # reference epsilon
    denom = sumexp * yg_                                             # [TB, 1]
    inv_denom = pl.reciprocal(denom, approx=False)                   # per-row reciprocal
    log_denom = jnp.log(denom)                                       # per-row log

    # Px = softmax / Yg_ = e / denom ;  log(Px) = z - log(denom)
    px = e * inv_denom                                          # [TB, C]
    px_log = z - log_denom                                      # [TB, C]

    # Complement ("zerohot") mask; padded / out-of-bounds rows have yc = -2
    # (or garbage logits) and are zeroed here, so they contribute nothing.
    keep = jnp.logical_and(jnp.logical_not(group), yc >= 0)
    out = jnp.where(keep, px * px_log, 0.0)                     # [TB, C]

    # Per-class partial sums (lane-dense store); final tiny reduce in wrapper.
    out_ref[...] = jnp.sum(out, axis=0, keepdims=True)


def outer_complement_entropy(yhat, y_fine, fine2coarse):
    """Pallas-backed OuterComplementEntropy.forward."""
    b, c = yhat.shape
    fine2coarse = fine2coarse.astype(jnp.int32)
    f2c_row = fine2coarse.reshape(1, c)

    # --- choose batch tile ---
    # Large tiles for HBM roofline, but aim for >= 2 tiles so both v7x
    # TensorCores get work under dimension_semantics=("parallel",).
    if b < 8:
        tb = b                                      # block == full array dim
    else:
        half = _cdiv(b, 2)
        tb = min(MAX_TILE_B, _round_up(max(half, 8), 8))
    num_tiles = _cdiv(b, tb)
    b_pad = num_tiles * tb

    # Per-sample coarse label column; rows past the true batch marked -2
    # (never matches any coarse id), so ragged-edge tiles are masked in-kernel.
    y_coarse = fine2coarse[y_fine].astype(jnp.int32)
    yc_col = jnp.full((b_pad, 1), -2, dtype=jnp.int32).at[:b, 0].set(y_coarse)

    partials = pl.pallas_call(
        _oce_kernel,
        out_shape=jax.ShapeDtypeStruct((num_tiles, 1, c), jnp.float32),
        grid=(num_tiles,),
        in_specs=[
            pl.BlockSpec((1, c), lambda i: (0, 0)),      # fine->coarse map (shared)
            pl.BlockSpec((tb, 1), lambda i: (i, 0)),     # coarse labels for this tile
            pl.BlockSpec((tb, c), lambda i: (i, 0)),     # logits tile (unpadded array)
        ],
        out_specs=pl.BlockSpec((None, 1, c), lambda i: (i, 0, 0)),
        compiler_params=pltpu.CompilerParams(
            dimension_semantics=("parallel",),
            vmem_limit_bytes=32 * 1024 * 1024,
        ),
    )(f2c_row, yc_col, yhat)

    # Final tiny reduction + normalization by the TRUE batch / class counts.
    return jnp.sum(partials) / float(b) / float(c)


def _reference(yhat, y_fine, fine2coarse):
    """Pure-JAX reference mirroring the PyTorch code."""
    b, c = yhat.shape
    p = jax.nn.softmax(yhat.astype(jnp.float32), axis=1)
    group = (fine2coarse[None, :] == fine2coarse[y_fine][:, None]).astype(jnp.float32)
    yg = jnp.sum(p * group, axis=1, keepdims=True)
    yg_ = 1.0 - yg + 1e-07
    px = p / yg_
    px_log = jnp.log(jnp.maximum(px, 1e-10))   # clamp(min=1e-10)
    out = px * px_log * (1.0 - group)
    return jnp.sum(out) / float(b) / float(c)


if __name__ == "__main__":
    key = jax.random.PRNGKey(0)

    # Deterministic fine->coarse map: 20 coarse classes x 5 fine classes each.
    fine2coarse = jnp.arange(FINE_CLASSES, dtype=jnp.int32) // COARSE_GROUP_SIZE

    # The group-mask shortcut requires exactly COARSE_GROUP_SIZE fine classes
    # per coarse class (matches the hard-coded torch.topk(k=5)).
    counts = jnp.bincount(fine2coarse, length=FINE_CLASSES // COARSE_GROUP_SIZE)
    assert bool(jnp.all(counts == COARSE_GROUP_SIZE))

    # Primary small case (single tile) + two extra cases exercising multiple
    # tiles and the ragged (masked) last batch tile.
    for batch in (8, 13, 24):
        k1, k2, key = jax.random.split(key, 3)
        yhat = jax.random.normal(k1, (batch, FINE_CLASSES), dtype=jnp.float32)
        y_fine = jax.random.randint(k2, (batch,), 0, FINE_CLASSES, dtype=jnp.int32)

        loss = outer_complement_entropy(yhat, y_fine, fine2coarse)
        loss = jax.block_until_ready(loss)

        ref = _reference(yhat, y_fine, fine2coarse)
        assert jnp.allclose(loss, ref, rtol=1e-5, atol=1e-6), (batch, loss, ref)

    print("KERNEL_OK")
</pallas_src>

<mosaic_0001>
module attributes {stable_mosaic.version = 11 : i64} {
  func.func @_oce_kernel(%arg0: i32, %arg1: memref<1x100xi32, #tpu.memory_space<vmem>>, %arg2: memref<8x1xi32, #tpu.memory_space<vmem>>, %arg3: memref<8x100xf32, #tpu.memory_space<vmem>>, %arg4: memref<1x1x100xf32, #tpu.memory_space<vmem>>) attributes {dimension_semantics = [#tpu.dimension_semantics<parallel>], iteration_bounds = array<i64: 1>, scalar_prefetch = 0 : i64, scratch_operands = 0 : i64, tpu.core_type = #tpu.core_type<tc>, window_params = [{pipeline_mode = #tpu.pipeline_mode<synchronous>, transform_indices = @transform_0, window_bounds = array<i64: 1, 100>}, {transform_indices = @transform_1, window_bounds = array<i64: 8, 1>}, {transform_indices = @transform_2, window_bounds = array<i64: 8, 100>}, {transform_indices = @transform_3, window_bounds = array<i64: 1, 1, 100>}]} {
    %c0 = arith.constant 0 : index
    %c0_0 = arith.constant 0 : index
    %0 = vector.load %arg3[%c0, %c0_0] : memref<8x100xf32, #tpu.memory_space<vmem>>, vector<8x100xf32>
    %c0_1 = arith.constant 0 : index
    %c0_2 = arith.constant 0 : index
    %1 = vector.load %arg1[%c0_1, %c0_2] : memref<1x100xi32, #tpu.memory_space<vmem>>, vector<1x100xi32>
    %c0_3 = arith.constant 0 : index
    %c0_4 = arith.constant 0 : index
    %2 = vector.load %arg2[%c0_3, %c0_4] : memref<8x1xi32, #tpu.memory_space<vmem>>, vector<8x1xi32>
    %cst = arith.constant dense<0xFF800000> : vector<8xf32>
    %3 = vector.multi_reduction <maximumf>, %0, %cst [1] : vector<8x100xf32> to vector<8xf32>
    %4 = vector.shape_cast %3 : vector<8xf32> to vector<8x1xf32>
    %5 = vector.broadcast %4 : vector<8x1xf32> to vector<8x100xf32>
    %6 = arith.subf %0, %5 : vector<8x100xf32>
    %7 = math.exp %6 : vector<8x100xf32>
    %cst_5 = arith.constant dense<0.000000e+00> : vector<8xf32>
    %8 = vector.multi_reduction <add>, %7, %cst_5 [1] : vector<8x100xf32> to vector<8xf32>
    %9 = vector.shape_cast %8 : vector<8xf32> to vector<8x1xf32>
    %10 = vector.broadcast %1 : vector<1x100xi32> to vector<8x100xi32>
    %11 = vector.broadcast %2 : vector<8x1xi32> to vector<8x100xi32>
    %12 = arith.cmpi eq, %10, %11 : vector<8x100xi32>
    %cst_6 = arith.constant 0.000000e+00 : f32
    %13 = vector.broadcast %cst_6 : f32 to vector<8x100xf32>
    %14 = arith.select %12, %7, %13 : vector<8x100xi1>, vector<8x100xf32>
    %cst_7 = arith.constant dense<0.000000e+00> : vector<8xf32>
    %15 = vector.multi_reduction <add>, %14, %cst_7 [1] : vector<8x100xf32> to vector<8xf32>
    %16 = vector.shape_cast %15 : vector<8xf32> to vector<8x1xf32>
    %17 = tpu.reciprocal %9 : vector<8x1xf32> -> vector<8x1xf32>
    %18 = arith.mulf %16, %17 : vector<8x1xf32>
    %cst_8 = arith.constant 1.000000e+00 : f32
    %19 = vector.broadcast %cst_8 : f32 to vector<8x1xf32>
    %20 = arith.subf %19, %18 : vector<8x1xf32>
    %cst_9 = arith.constant 1.000000e-07 : f32
    %21 = vector.broadcast %cst_9 : f32 to vector<8x1xf32>
    %22 = arith.addf %20, %21 : vector<8x1xf32>
    %23 = arith.mulf %9, %22 : vector<8x1xf32>
    %24 = tpu.reciprocal %23 : vector<8x1xf32> -> vector<8x1xf32>
    %25 = math.log %23 : vector<8x1xf32>
    %26 = vector.broadcast %24 : vector<8x1xf32> to vector<8x100xf32>
    %27 = arith.mulf %7, %26 : vector<8x100xf32>
    %28 = vector.broadcast %25 : vector<8x1xf32> to vector<8x100xf32>
    %29 = arith.subf %6, %28 : vector<8x100xf32>
    %cst_10 = arith.constant dense<true> : vector<8x100xi1>
    %30 = arith.xori %12, %cst_10 : vector<8x100xi1>
    %c0_i32 = arith.constant 0 : i32
    %31 = vector.broadcast %c0_i32 : i32 to vector<8x1xi32>
    %32 = arith.cmpi sge, %2, %31 : vector<8x1xi32>
    %33 = vector.broadcast %32 : vector<8x1xi1> to vector<8x100xi1>
    %34 = arith.andi %30, %33 : vector<8x100xi1>
    %35 = arith.mulf %27, %29 : vector<8x100xf32>
    %cst_11 = arith.constant 0.000000e+00 : f32
    %36 = vector.broadcast %cst_11 : f32 to vector<8x100xf32>
    %37 = arith.select %34, %35, %36 : vector<8x100xi1>, vector<8x100xf32>
    %cst_12 = arith.constant dense<0.000000e+00> : vector<100xf32>
    %38 = vector.multi_reduction <add>, %37, %cst_12 [0] : vector<8x100xf32> to vector<100xf32>
    %39 = vector.shape_cast %38 : vector<100xf32> to vector<1x100xf32>
    %c0_13 = arith.constant 0 : index
    %c0_14 = arith.constant 0 : index
    %c0_15 = arith.constant 0 : index
    %40 = vector.load %arg4[%c0_13, %c0_14, %c0_15] : memref<1x1x100xf32, #tpu.memory_space<vmem>>, vector<1x1x100xf32>
    %41 = vector.shape_cast %40 : vector<1x1x100xf32> to vector<1x100xf32>
    %42 = vector.shape_cast %39 : vector<1x100xf32> to vector<1x1x100xf32>
    tpu.vector_store %arg4[%c0_13, %c0_14, %c0_15], %42 {strides = array<i32>} : memref<1x1x100xf32, #tpu.memory_space<vmem>>, vector<1x1x100xf32>,
    return
  }
  func.func @transform_0(%arg0: i32) -> (i32, i32) {
    %c0_i32 = arith.constant 0 : i32
    %c0_i32_0 = arith.constant 0 : i32
    %c0_i32_1 = arith.constant 0 : i32
    return %c0_i32, %c0_i32_0 : i32, i32
  }
  func.func @transform_1(%arg0: i32) -> (i32, i32) {
    %c0_i32 = arith.constant 0 : i32
    %c0_i32_0 = arith.constant 0 : i32
    return %arg0, %c0_i32 : i32, i32
  }
  func.func @transform_2(%arg0: i32) -> (i32, i32) {
    %c0_i32 = arith.constant 0 : i32
    %c0_i32_0 = arith.constant 0 : i32
    return %arg0, %c0_i32 : i32, i32
  }
  func.func @transform_3(%arg0: i32) -> (i32, i32, i32) {
    %c0_i32 = arith.constant 0 : i32
    %c0_i32_0 = arith.constant 0 : i32
    %c0_i32_1 = arith.constant 0 : i32
    return %arg0, %c0_i32, %c0_i32_0 : i32, i32, i32
  }
}

</mosaic_0001>

<bundles_post_ra>
// kernel: tpu_custom_call.1
= control target key start
LH: loop header
LB: loop body
LE: loop exit
PB: predicated region body
PF: predicated region fallthrough
CT: control target
= control target key end

     0   :  { %vm18_vm0 = vcmask 818176   ;;  %s171_s0 = inlined_call_operand.vmem [shape: s32[1,100], index: 0, kind: input, shape index: {}]   ;;  %s172_s1 = inlined_call_operand.vmem [shape: s32[8,1], index: 1, kind: input, shape index: {}]   ;;  %s173_s2 = inlined_call_operand.vmem [shape: f32[8,100], index: 2, kind: input, shape index: {}]   ;;  %s174_s3 = inlined_call_operand.hbm [shape: f32[1,1,100], index: 3, kind: output, shape index: {}]  }
   0x1   :  { %v15_v0 = vld [vmem:[%s173_s2] sm:$0xff] }
   0x2   :  { %8 = vsyncpa [#allocation3], 0  ;;  %v19_v1 = vsel %vm18_vm0, %v15_v0, -inf  ;;  %v121_v2 = vmov 0   ;;  %v17_v3 = vld [vmem:[%s172_s1] sm:$0xff]  ;;  %vm122_vm4 = vmmov 1  }
   0x3   :  { %87 = vset.pattern.permute.xlu0 %v121_v2  ;;  %88 = vset.pattern.permute.xlu1 %v121_v2  ;;  %vm51_vm1 = vcmp.ge.s32.totalorder %v17_v3, 0  ;;  %v83_v8 = vld [vmem:[%s171_s0] ss:$0 sm:$0xff]  ;;  %s123_s0 = smov [#allocation2]   ;;  %vm67_vm7 = vcmask 811008  }
   0x4   :  { %20 = vmax.xlane.f32.xlu0 %v19_v1  ;;  %v52_v4 = vsel %vm51_vm1, 1, %v121_v2  ;;  %s75_s1 = sshll.u32 %s123_s0, 4  ;;  %s76_s1 = int_to_ptr.vmem [resolvable:$true] %s75_s1 }
   0x5   :  { %s97_s17 = scalar_lea.vmem %s76_s1, 16  ;;  %s101_s18 = scalar_lea.vmem %s76_s1, 32 }
   0x6   :  { %p98_p0 = scmp.ne.s32.totalorder %s76_s1, %s97_s17  ;;  %p102_p1 = scmp.lt.s32.totalorder %s76_s1, %s76_s1 }
   0x7   :  { %p103_p2 = scmp.lt.s32.totalorder %s101_s18, %s97_s17 }
   0x9   :  { %p104_p3 = por %p103_p2, %p102_p1 }
   0xb   :  { %p105_p4 = pnand %p104_p3, %p98_p0 }
  0x1a   :  { %33 = vperm.xlu0 %87, %v17_v3  }
  0x91   :  { %v21_v5 = vpop.xlane.xlu0 %20 }
  0x92   :  { %v22_v6 = vsub.f32 %v15_v0, %v21_v5 }
  0x94   :  { %v23_v7 = vmul.f32 1.442695, %v22_v6 }
  0x96   :  { %89 = vpow2.f32 %v23_v7 }
  0x99   :  { %v34_v9 = vpop.permute.xlu0 %33 }
  0x9a   :  { %vm35_vm2 = vcmp.eq.s32.totalorder %v83_v8, %v34_v9 }
  0x9b   :  { %vm50_vm5 = vmxor %vm35_vm2, %vm122_vm4 }
  0xa0   :  { %v90_v10 = vpop.eup %89 }
  0xa1   :  { %v25_v11 = vsel %vm18_vm0, %v90_v10, 0.0  ;;  %v36_v12 = vsel %vm35_vm2, %v90_v10, 0.0 }
  0xa2   :  { %26 = vadd.xlane.f32.xlu1 %v25_v11  ;;  %v37_v13 = vsel %vm18_vm0, %v36_v12, 0.0 }
  0xa6   :  { %38 = vadd.xlane.f32.xlu1 %v37_v13 }
  0xb7   :  { %54 = vperm.xlu1 %88, %v52_v4  }
 0x12f   :  { %v27_v14 = vpop.xlane.xlu1 %26 }
 0x130   :  { %91 = vrcp.f32 %v27_v14 }
 0x133   :  { %v39_v16 = vpop.xlane.xlu1 %38 }
 0x137   :  { %v55_v23 = vpop.permute.xlu1 %54 }
 0x138   :  { %vm56_vm3 = vcmp.eq.s32.totalorder %v55_v23, 1 }
 0x139   :  { %vm57_vm6 = vmand %vm50_vm5, %vm56_vm3 }
 0x13a   :  { %v92_v15 = vpop.eup %91 }
 0x13b   :  { %v41_v17 = vmul.f32 %v92_v15, %v39_v16 }
 0x13d   :  { %v42_v18 = vsub.f32 1.0, %v41_v17 }
 0x13f   :  { %v43_v19 = vadd.f32 1e-07, %v42_v18 }
 0x141   :  { %v44_v20 = vmul.f32 %v43_v19, %v27_v14 }
 0x143   :  { %93 = vrcp.f32 %v44_v20 }
 0x144   :  { %95 = vlog2.f32 %v44_v20 }
 0x14d   :  { %v94_v21 = vpop.eup %93 }
 0x14e   :  { %v96_v22 = vpop.eup %95  ;;  %v48_v25 = vmul.f32 %v94_v21, %v90_v10 }
 0x14f   :  { %v47_v24 = vmul.f32 0.6931472, %v96_v22 }
 0x151   :  { %v49_v26 = vsub.f32 %v22_v6, %v47_v24 }
 0x153   :  { %v58_v27 = vmul.f32 %v49_v26, %v48_v25 }
 0x155   :  { %v59_v28 = vsel %vm57_vm6, %v58_v27, 0.0 }
 0x156   :  { %v60_v29 = vsel %vm18_vm0, %v59_v28, 0.0 }
 0x157   :  { %v61_v30 = vrot.slane %v60_v29, 4 }
 0x159   :  { %v62_v31 = vadd.f32 %v61_v30, %v60_v29 }
 0x15b   :  { %v63_v32 = vrot.slane %v62_v31, 2 }
 0x15d   :  { %v64_v33 = vadd.f32 %v63_v32, %v62_v31 }
 0x15f   :  { %v65_v34 = vrot.slane %v64_v33, 1 }
 0x161   :  { %v66_v35 = vadd.f32 %v65_v34, %v64_v33 }
 0x163   :  { %68 = vst.msk [vmem:[#allocation2] sm:$0x1] %vm67_vm7, %v66_v35 }
 0x164   :  { %108 = shalt.err (!%p105_p4)
}
 0x165   :  { %s109_s21 = scalar_lea.hbm %s174_s3, 16 }
 0x166   :  { %p110_p5 = scmp.ne.s32.totalorder %s174_s3, %s109_s21  ;;  %p113_p6 = scmp.lt.u32.totalorder %s109_s21, %s174_s3 }
 0x168   :  { %p115_p7 = pnand %p113_p6, %p110_p5 }
 0x16a   :  { %118 = shalt.err (!%p115_p7)
}
 0x16b   :  { %78 = dma.vmem_to_hbm [thread:$0]  %s76_s1, 16, %s174_s3, [#allocation3]  }
 0x16c   :  { %119 = dma.done.wait [#allocation3], 16  }
 0x16d   :  { %120 = vsyncadd [#allocation3], 4294967280 }
 0x16e   :  { %82 = vsyncpa [#allocation3], 1 }

</bundles_post_ra>
